<compile_context>
chip_gen: v7x
topology: tpu7x:2x2x1
jax: 0.10.0
libtpu: 0.0.40
codegen_flags: <defaults>
</compile_context>

<pallas_src>
import jax
import jax.numpy as jnp
import numpy as np
from jax.experimental import pallas as pl
from jax.experimental.pallas import tpu as pltpu

INPUT_SIZE = 82
HIDDEN_SIZE = 512
OUTPUT_SIZE = 66


def _round_up(x, m):
    return ((x + m - 1) // m) * m


def decoder_kernel(x_ref, w1_ref, b1_ref, w2_ref, b2_ref, o_ref):
    # Cast activations to the weight dtype on the VPU (bf16 path feeds the
    # native MXU pipe; f32 path makes this a no-op cast).
    x = x_ref[...].astype(w1_ref.dtype)
    # fc1: (tm, d_in) @ (d_in, d_hid) with f32 accumulation on the MXU.
    # d_in (=82) is a full-extent block dim; Mosaic masks the K remainder.
    h = jnp.dot(x, w1_ref[...], preferred_element_type=jnp.float32)
    # Bias + ReLU in f32 on the VPU.  dropout(p=0) == identity.
    h = jnp.maximum(h + b1_ref[...], 0.0)
    # fc2, again in the weight dtype with f32 accumulation.
    o = jnp.dot(h.astype(w2_ref.dtype), w2_ref[...],
                preferred_element_type=jnp.float32)
    o_ref[...] = (o + b2_ref[...]).astype(o_ref.dtype)


def prepare_decoder_params(w1, b1, w2, b2, *, compute_dtype=jnp.bfloat16):
    """One-time parameter preparation -- call at module init and cache.

    w1: (hidden, in)  nn.Linear layout     b1: (hidden,)
    w2: (out, hidden) nn.Linear layout     b2: (out,)
    Returns a dict consumed by decoder_forward.
    """
    d_hid, d_in = w1.shape
    d_out = w2.shape[0]
    d_hid_p = _round_up(d_hid, 128)   # 512 -> 512 (already aligned)
    d_out_p = _round_up(d_out, 128)   # 66  -> 128 (lane-dense stores)
    cdt = compute_dtype
    # Transpose to (in, out); zero-pad output feature dims.  Zero padding keeps
    # semantics exact: padded hidden cols stay 0 through ReLU, padded output
    # cols are sliced off (or ignored by the consumer).
    w1t = jnp.zeros((d_in, d_hid_p), cdt).at[:, :d_hid].set(w1.T.astype(cdt))
    w2t = jnp.zeros((d_hid_p, d_out_p), cdt).at[:d_hid, :d_out].set(w2.T.astype(cdt))
    b1p = jnp.zeros((1, d_hid_p), jnp.float32).at[0, :d_hid].set(b1.astype(jnp.float32))
    b2p = jnp.zeros((1, d_out_p), jnp.float32).at[0, :d_out].set(b2.astype(jnp.float32))
    return {"w1t": w1t, "b1p": b1p, "w2t": w2t, "b2p": b2p,
            "d_in": d_in, "d_out": d_out}


def decoder_forward(x, params, *, tm=None, return_padded=False):
    """Fused Decoder forward.  x: (B, in_features) float32."""
    B, d_in = x.shape
    w1t, b1p, w2t, b2p = params["w1t"], params["b1p"], params["w2t"], params["b2p"]
    d_out = params["d_out"]
    assert d_in == params["d_in"]
    d_hid_p = w1t.shape[1]
    d_out_p = w2t.shape[1]

    # Batch tile selection:
    #  * B <= 256: single grid step, full-extent batch block.
    #  * larger B: 256..1024-row, 128-aligned tiles with >= 2 grid steps so
    #    ("parallel",) can shard the batch across both v7x TensorCores.
    if tm is None:
        if B <= 256:
            tm = B
        else:
            tm = min(1024, _round_up(pl.cdiv(B, 2), 256))
    num_tiles = pl.cdiv(B, tm)

    w_itemsize = jnp.dtype(w1t.dtype).itemsize
    cost = pl.CostEstimate(
        flops=2 * B * (d_in * d_hid_p + d_hid_p * d_out_p),
        transcendentals=0,
        bytes_accessed=(x.size * x.dtype.itemsize
                        + (w1t.size + w2t.size) * w_itemsize
                        + (b1p.size + b2p.size) * 4
                        + B * d_out_p * x.dtype.itemsize),
    )

    out_p = pl.pallas_call(
        decoder_kernel,
        out_shape=jax.ShapeDtypeStruct((B, d_out_p), x.dtype),
        grid_spec=pltpu.PrefetchScalarGridSpec(
            num_scalar_prefetch=0,
            grid=(num_tiles,),
            in_specs=[
                # batch-tiled activations, unpadded last dim (full extent)
                pl.BlockSpec((tm, d_in), lambda i: (i, 0)),
                # weights / biases: constant index maps -> resident across grid
                pl.BlockSpec((d_in, d_hid_p), lambda i: (0, 0)),
                pl.BlockSpec((1, d_hid_p), lambda i: (0, 0)),
                pl.BlockSpec((d_hid_p, d_out_p), lambda i: (0, 0)),
                pl.BlockSpec((1, d_out_p), lambda i: (0, 0)),
            ],
            out_specs=pl.BlockSpec((tm, d_out_p), lambda i: (i, 0)),
        ),
        compiler_params=pltpu.CompilerParams(
            dimension_semantics=("parallel",),
        ),
        cost_estimate=cost,
    )(x, w1t, b1p, w2t, b2p)

    if return_padded:
        return out_p            # (B, 128) slab; cols [d_out:] are the padding
    return out_p[:, :d_out]


def decoder_reference(x, w1, b1, w2, b2):
    h = jnp.maximum(x @ w1.T + b1, 0.0)
    return h @ w2.T + b2


if __name__ == "__main__":
    key = jax.random.PRNGKey(0)
    k_x, k_w1, k_b1, k_w2, k_b2, k_x2 = jax.random.split(key, 6)

    # Params in nn.Linear layout: weight (out, in), bias (out,)
    w1 = (jax.random.normal(k_w1, (HIDDEN_SIZE, INPUT_SIZE), dtype=jnp.float32)
          * (1.0 / np.sqrt(INPUT_SIZE)))
    b1 = jax.random.normal(k_b1, (HIDDEN_SIZE,), dtype=jnp.float32) * 0.01
    w2 = (jax.random.normal(k_w2, (OUTPUT_SIZE, HIDDEN_SIZE), dtype=jnp.float32)
          * (1.0 / np.sqrt(HIDDEN_SIZE)))
    b2 = jax.random.normal(k_b2, (OUTPUT_SIZE,), dtype=jnp.float32) * 0.01

    # One-time param prep (cached), for both compute paths.
    params_bf16 = prepare_decoder_params(w1, b1, w2, b2, compute_dtype=jnp.bfloat16)
    params_f32 = prepare_decoder_params(w1, b1, w2, b2, compute_dtype=jnp.float32)

    # --- small batch (single-step grid, full-extent batch block) ---
    B = 16
    x = jax.random.normal(k_x, (B, INPUT_SIZE), dtype=jnp.float32)
    ref = jax.block_until_ready(decoder_reference(x, w1, b1, w2, b2))

    out_f32 = jax.block_until_ready(decoder_forward(x, params_f32))
    np.testing.assert_allclose(np.asarray(out_f32), np.asarray(ref),
                               rtol=1e-5, atol=1e-5)

    out_bf16 = jax.block_until_ready(decoder_forward(x, params_bf16))
    np.testing.assert_allclose(np.asarray(out_bf16), np.asarray(ref),
                               rtol=5e-2, atol=5e-2)

    # --- larger ragged batch (multi-step parallel grid, tm=256, grid=2) ---
    B2 = 300
    x2 = jax.random.normal(k_x2, (B2, INPUT_SIZE), dtype=jnp.float32)
    ref2 = jax.block_until_ready(decoder_reference(x2, w1, b1, w2, b2))
    out2 = jax.block_until_ready(decoder_forward(x2, params_bf16))
    np.testing.assert_allclose(np.asarray(out2), np.asarray(ref2),
                               rtol=5e-2, atol=5e-2)

    print("KERNEL_OK")
</pallas_src>

<mosaic_0001>
module attributes {stable_mosaic.version = 11 : i64} {
  func.func @decoder_kernel(%arg0: i32, %arg1: memref<16x82xf32, #tpu.memory_space<vmem>>, %arg2: memref<82x512xf32, #tpu.memory_space<vmem>>, %arg3: memref<1x512xf32, #tpu.memory_space<vmem>>, %arg4: memref<512x128xf32, #tpu.memory_space<vmem>>, %arg5: memref<1x128xf32, #tpu.memory_space<vmem>>, %arg6: memref<16x128xf32, #tpu.memory_space<vmem>>) attributes {dimension_semantics = [#tpu.dimension_semantics<parallel>], iteration_bounds = array<i64: 1>, scalar_prefetch = 0 : i64, scratch_operands = 0 : i64, tpu.core_type = #tpu.core_type<tc>, window_params = [{transform_indices = @transform_0, window_bounds = array<i64: 16, 82>}, {pipeline_mode = #tpu.pipeline_mode<synchronous>, transform_indices = @transform_1, window_bounds = array<i64: 82, 512>}, {pipeline_mode = #tpu.pipeline_mode<synchronous>, transform_indices = @transform_2, window_bounds = array<i64: 1, 512>}, {pipeline_mode = #tpu.pipeline_mode<synchronous>, transform_indices = @transform_3, window_bounds = array<i64: 512, 128>}, {pipeline_mode = #tpu.pipeline_mode<synchronous>, transform_indices = @transform_4, window_bounds = array<i64: 1, 128>}, {transform_indices = @transform_5, window_bounds = array<i64: 16, 128>}]} {
    %c0 = arith.constant 0 : index
    %c0_0 = arith.constant 0 : index
    %0 = vector.load %arg1[%c0, %c0_0] : memref<16x82xf32, #tpu.memory_space<vmem>>, vector<16x82xf32>
    %c0_1 = arith.constant 0 : index
    %c0_2 = arith.constant 0 : index
    %1 = vector.load %arg2[%c0_1, %c0_2] : memref<82x512xf32, #tpu.memory_space<vmem>>, vector<82x512xf32>
    %cst = arith.constant dense<0.000000e+00> : vector<16x512xf32>
    %2 = tpu.matmul %0, %1, %cst {dimension_numbers = #tpu.dot_dimension_numbers<[1], [0], [0], [1], [0, 0, 1, 1], [], []>} : vector<16x82xf32>, vector<82x512xf32>, vector<16x512xf32> -> vector<16x512xf32>
    %c0_3 = arith.constant 0 : index
    %c0_4 = arith.constant 0 : index
    %3 = vector.load %arg3[%c0_3, %c0_4] : memref<1x512xf32, #tpu.memory_space<vmem>>, vector<1x512xf32>
    %4 = vector.broadcast %3 : vector<1x512xf32> to vector<16x512xf32>
    %5 = arith.addf %2, %4 : vector<16x512xf32>
    %cst_5 = arith.constant 0.000000e+00 : f32
    %6 = vector.broadcast %cst_5 : f32 to vector<16x512xf32>
    %7 = arith.maximumf %5, %6 : vector<16x512xf32>
    %c0_6 = arith.constant 0 : index
    %c0_7 = arith.constant 0 : index
    %8 = vector.load %arg4[%c0_6, %c0_7] : memref<512x128xf32, #tpu.memory_space<vmem>>, vector<512x128xf32>
    %cst_8 = arith.constant dense<0.000000e+00> : vector<16x128xf32>
    %9 = tpu.matmul %7, %8, %cst_8 {dimension_numbers = #tpu.dot_dimension_numbers<[1], [0], [0], [1], [0, 0, 1, 1], [], []>} : vector<16x512xf32>, vector<512x128xf32>, vector<16x128xf32> -> vector<16x128xf32>
    %c0_9 = arith.constant 0 : index
    %c0_10 = arith.constant 0 : index
    %10 = vector.load %arg5[%c0_9, %c0_10] : memref<1x128xf32, #tpu.memory_space<vmem>>, vector<1x128xf32>
    %11 = vector.broadcast %10 : vector<1x128xf32> to vector<16x128xf32>
    %12 = arith.addf %9, %11 : vector<16x128xf32>
    %c0_11 = arith.constant 0 : index
    %c0_12 = arith.constant 0 : index
    %13 = vector.load %arg6[%c0_11, %c0_12] : memref<16x128xf32, #tpu.memory_space<vmem>>, vector<16x128xf32>
    tpu.vector_store %arg6[%c0_11, %c0_12], %12 {strides = array<i32>} : memref<16x128xf32, #tpu.memory_space<vmem>>, vector<16x128xf32>,
    return
  }
  func.func @transform_0(%arg0: i32) -> (i32, i32) {
    %c0_i32 = arith.constant 0 : i32
    %c0_i32_0 = arith.constant 0 : i32
    return %arg0, %c0_i32 : i32, i32
  }
  func.func @transform_1(%arg0: i32) -> (i32, i32) {
    %c0_i32 = arith.constant 0 : i32
    %c0_i32_0 = arith.constant 0 : i32
    %c0_i32_1 = arith.constant 0 : i32
    return %c0_i32, %c0_i32_0 : i32, i32
  }
  func.func @transform_2(%arg0: i32) -> (i32, i32) {
    %c0_i32 = arith.constant 0 : i32
    %c0_i32_0 = arith.constant 0 : i32
    %c0_i32_1 = arith.constant 0 : i32
    return %c0_i32, %c0_i32_0 : i32, i32
  }
  func.func @transform_3(%arg0: i32) -> (i32, i32) {
    %c0_i32 = arith.constant 0 : i32
    %c0_i32_0 = arith.constant 0 : i32
    %c0_i32_1 = arith.constant 0 : i32
    return %c0_i32, %c0_i32_0 : i32, i32
  }
  func.func @transform_4(%arg0: i32) -> (i32, i32) {
    %c0_i32 = arith.constant 0 : i32
    %c0_i32_0 = arith.constant 0 : i32
    %c0_i32_1 = arith.constant 0 : i32
    return %c0_i32, %c0_i32_0 : i32, i32
  }
  func.func @transform_5(%arg0: i32) -> (i32, i32) {
    %c0_i32 = arith.constant 0 : i32
    %c0_i32_0 = arith.constant 0 : i32
    return %arg0, %c0_i32 : i32, i32
  }
}

</mosaic_0001>

<bundles_post_ra>
// kernel: tpu_custom_call.1
= control target key start
LH: loop header
LB: loop body
LE: loop exit
PB: predicated region body
PF: predicated region fallthrough
CT: control target
= control target key end

     0   :  { %10 = vsyncpa [#allocation3], 0  ;;  %s959_s0 = inlined_call_operand.hbm [shape: f32[16,82], index: 0, kind: input, shape index: {}]   ;;  %s960_s1 = inlined_call_operand.hbm [shape: f32[82,512], index: 1, kind: input, shape index: {}]   ;;  %s961_s2 = inlined_call_operand.vmem [shape: f32[1,512], index: 2, kind: input, shape index: {}]   ;;  %s962_s3 = inlined_call_operand.hbm [shape: f32[512,128], index: 3, kind: input, shape index: {}]   ;;  %s963_s4 = inlined_call_operand.vmem [shape: f32[1,128], index: 4, kind: input, shape index: {}]   ;;  %s964_s5 = inlined_call_operand.hbm [shape: f32[16,128], index: 5, kind: output, shape index: {}]  }
   0x1   :  { %11 = vsyncpa [#allocation6], 0 }
   0x2   :  { %12 = vsyncpa [#allocation4], 0  ;;  %s845_s18 = smov [#allocation5]   ;;  %s751_s22 = scalar_lea.hbm %s960_s1, 5632 }
   0x3   :  { %s30_s19 = sshll.u32 %s845_s18, 4  ;;  %p752_p0 = scmp.ne.s32.totalorder %s960_s1, %s751_s22  ;;  %s31_s19 = int_to_ptr.vmem [resolvable:$true] %s30_s19 }
   0x4   :  { %p755_p1 = scmp.lt.u32.totalorder %s751_s22, %s960_s1 }
   0x6   :  { %p757_p2 = pnand %p755_p1, %p752_p0 }
   0x8   :  { %760 = shalt.err (!%p757_p2)
}
   0x9   :  { %s761_s27 = scalar_lea.vmem %s31_s19, 5632  ;;  %p766_p4 = scmp.lt.s32.totalorder %s31_s19, %s31_s19 }
   0xa   :  { %p762_p3 = scmp.ne.s32.totalorder %s31_s19, %s761_s27  ;;  %p767_p5 = scmp.lt.s32.totalorder %s761_s27, %s761_s27 }
   0xc   :  { %p768_p6 = por %p767_p5, %p766_p4 }
   0xe   :  { %p769_p7 = pnand %p768_p6, %p762_p3 }
  0x10   :  { %772 = shalt.err (!%p769_p7)
}
  0x11   :  { %s846_s28 = smov 512   ;;  %s847_s29 = smov 32  }
  0x12   :  { %36 = dma.hbm_to_vmem [thread:$0]  %s960_s1, 5632, %s31_s19, [#allocation6], %s846_s28, %s846_s28, %s847_s29  }
  0x13   :  { %s848_s7 = smov [#allocation2]   ;;  %s773_s11 = scalar_lea.hbm %s959_s0, 256 }
  0x14   :  { %s18_s8 = sshll.u32 %s848_s7, 4  ;;  %p774_p8 = scmp.ne.s32.totalorder %s959_s0, %s773_s11  ;;  %s19_s8 = int_to_ptr.vmem [resolvable:$true] %s18_s8 }
  0x15   :  { %p777_p9 = scmp.lt.u32.totalorder %s773_s11, %s959_s0 }
  0x17   :  { %p779_p10 = pnand %p777_p9, %p774_p8 }
  0x19   :  { %782 = shalt.err (!%p779_p10)
}
  0x1a   :  { %s783_s16 = scalar_lea.vmem %s19_s8, 256  ;;  %p788_p12 = scmp.lt.s32.totalorder %s19_s8, %s19_s8 }
  0x1b   :  { %p784_p11 = scmp.ne.s32.totalorder %s19_s8, %s783_s16  ;;  %p789_p13 = scmp.lt.s32.totalorder %s783_s16, %s783_s16 }
  0x1d   :  { %p790_p0 = por %p789_p13, %p788_p12 }
  0x1f   :  { %p791_p1 = pnand %p790_p0, %p784_p11 }
  0x21   :  { %794 = shalt.err (!%p791_p1)
}
  0x22   :  { %s849_s1 = smov 128   ;;  %s850_s17 = smov 8  }
  0x23   :  { %24 = dma.hbm_to_vmem [thread:$0]  %s959_s0, 256, %s19_s8, [#allocation3], %s849_s1, %s849_s1, %s850_s17  }
  0x24   :  { %s851_s20 = smov [#allocation7]   ;;  %s795_s24 = scalar_lea.hbm %s962_s3, 8192 }
  0x25   :  { %s44_s21 = sshll.u32 %s851_s20, 4  ;;  %p796_p2 = scmp.ne.s32.totalorder %s962_s3, %s795_s24  ;;  %s45_s21 = int_to_ptr.vmem [resolvable:$true] %s44_s21 }
  0x26   :  { %p799_p3 = scmp.lt.u32.totalorder %s795_s24, %s962_s3 }
  0x28   :  { %p801_p4 = pnand %p799_p3, %p796_p2 }
  0x2a   :  { %804 = shalt.err (!%p801_p4)
}
  0x2b   :  { %s805_s29 = scalar_lea.vmem %s45_s21, 8192  ;;  %p810_p6 = scmp.lt.s32.totalorder %s45_s21, %s45_s21 }
  0x2c   :  { %p806_p5 = scmp.ne.s32.totalorder %s45_s21, %s805_s29  ;;  %p811_p7 = scmp.lt.s32.totalorder %s805_s29, %s805_s29 }
  0x2e   :  { %p812_p8 = por %p811_p7, %p810_p6 }
  0x30   :  { %p813_p9 = pnand %p812_p8, %p806_p5 }
  0x32   :  { %816 = shalt.err (!%p813_p9)
}
  0x33   :  { %50 = dma.hbm_to_vmem [thread:$0]  %s962_s3, 8192, %s45_s21, [#allocation6], %s849_s1, %s849_s1, %s850_s17  }
  0x34   :  { %839 = dma.done.wait [#allocation3], 256  }
  0x35   :  { %840 = vsyncadd [#allocation3], 4294967040 }
  0x36   :  { %841 = dma.done.wait [#allocation6], 13824  }
  0x37   :  { %842 = vsyncadd [#allocation6], 4294953472  ;;  %v852_v0 = vmov 0.0   ;;  %v65_v1 = vld [vmem:[#allocation5 + $0x8] sm:$0xff]  ;;  %v67_v3 = vld [vmem:[#allocation5 + $0x18] sm:$0xff]  ;;  %vm137_vm0 = vcmask 1041408  }
  0x38   :  { %214 = vmatprep.mubr.f32.mxu0 %v852_v0  ;;  %291 = vmatprep.mubr.f32.mxu1 %v852_v0  ;;  %v69_v2 = vld [vmem:[#allocation5 + $0x28] sm:$0xff]  ;;  %v71_v5 = vld [vmem:[#allocation5 + $0x38] sm:$0xff]  ;;  %v64_v6 = vld [vmem:[#allocation5] sm:$0xff]  ;;  %vm130_vm1 = vcmask 670720   ;;  %s853_s8 = smov [#allocation8]  }
  0x39   :  { %v638_v4 = vpack.c.bf16 %v69_v2, %v65_v1  ;;  %v68_v7 = vld [vmem:[#allocation5 + $0x20] sm:$0xff]  ;;  %v658_v8 = vpack.c.bf16 %v71_v5, %v67_v3  ;;  %v66_v10 = vld [vmem:[#allocation5 + $0x10] sm:$0xff]  ;;  %v73_v12 = vld [vmem:[#allocation5 + $0x48] sm:$0xff]  ;;  %s540_s9 = sshll.u32 %s853_s8, 4  ;;  %s541_s9 = int_to_ptr.vmem [resolvable:$true] %s540_s9 }
  0x3a   :  { %v640_v9 = vpack.c.bf16 %v68_v7, %v64_v6  ;;  %v70_v11 = vld [vmem:[#allocation5 + $0x30] sm:$0xff]  ;;  %v77_v14 = vld [vmem:[#allocation5 + $0x68] sm:$0xff]  ;;  %v75_v15 = vld [vmem:[#allocation5 + $0x58] sm:$0xff]  ;;  %p822_p11 = scmp.lt.s32.totalorder %s541_s9, %s541_s9 }
  0x3b   :  { %639 = vmatprep.subr.bf16.mxu0 %v638_v4  ;;  %v660_v13 = vpack.c.bf16 %v70_v11, %v66_v10  ;;  %v79_v16 = vld [vmem:[#allocation5 + $0x78] sm:$0xff]  ;;  %659 = vmatprep.subr.bf16.mxu1 %v658_v8  ;;  %v642_v17 = vpack.c.bf16 %v77_v14, %v73_v12  ;;  %v72_v19 = vld [vmem:[#allocation5 + $0x40] sm:$0xff]  ;;  %v74_v21 = vld [vmem:[#allocation5 + $0x50] sm:$0xff] }
  0x3c   :  { %641 = vmatpush1.bf16.msra.mxu0 %v640_v9  ;;  %v662_v18 = vpack.c.bf16 %v79_v16, %v75_v15  ;;  %v76_v20 = vld [vmem:[#allocation5 + $0x60] sm:$0xff]  ;;  %v78_v23 = vld [vmem:[#allocation5 + $0x70] sm:$0xff]  ;;  %v81_v24 = vld [vmem:[#allocation5 + $0x88] sm:$0xff] }
  0x3d   :  { %661 = vmatpush1.bf16.msra.mxu1 %v660_v13  ;;  %v644_v22 = vpack.c.bf16 %v76_v20, %v72_v19  ;;  %v85_v25 = vld [vmem:[#allocation5 + $0xa8] sm:$0xff]  ;;  %643 = vmatprep.subr.bf16.mxu0 %v642_v17  ;;  %v664_v26 = vpack.c.bf16 %v78_v23, %v74_v21  ;;  %v83_v28 = vld [vmem:[#allocation5 + $0x98] sm:$0xff]  ;;  %v80_v30 = vld [vmem:[#allocation5 + $0x80] sm:$0xff] }
  0x3e   :  { %663 = vmatprep.subr.bf16.mxu1 %v662_v18  ;;  %v646_v27 = vpack.c.bf16 %v85_v25, %v81_v24  ;;  %v87_v29 = vld [vmem:[#allocation5 + $0xb8] sm:$0xff]  ;;  %v84_v32 = vld [vmem:[#allocation5 + $0xa0] sm:$0xff]  ;;  %v82_v33 = vld [vmem:[#allocation5 + $0x90] sm:$0xff] }
  0x3f   :  { %v666_v31 = vpack.c.bf16 %v87_v29, %v83_v28  ;;  %v86_v34 = vld [vmem:[#allocation5 + $0xb0] sm:$0xff]  ;;  %v648_v35 = vpack.c.bf16 %v84_v32, %v80_v30  ;;  %v89_v36 = vld [vmem:[#allocation5 + $0xc8] sm:$0xff]  ;;  %v91_v38 = vld [vmem:[#allocation5 + $0xd8] sm:$0xff] }
  0x40   :  { %645 = vmatpush1.bf16.msra.mxu0 %v644_v22  ;;  %v93_v37 = vld [vmem:[#allocation5 + $0xe8] sm:$0xff]  ;;  %v668_v39 = vpack.c.bf16 %v86_v34, %v82_v33  ;;  %v95_v41 = vld [vmem:[#allocation5 + $0xf8] sm:$0xff]  ;;  %v88_v42 = vld [vmem:[#allocation5 + $0xc0] sm:$0xff] }
  0x41   :  { %665 = vmatpush1.bf16.msra.mxu1 %v664_v26  ;;  %647 = vmatprep.subr.bf16.mxu0 %v646_v27  ;;  %v650_v40 = vpack.c.bf16 %v93_v37, %v89_v36  ;;  %v92_v43 = vld [vmem:[#allocation5 + $0xe0] sm:$0xff]  ;;  %v670_v44 = vpack.c.bf16 %v95_v41, %v91_v38  ;;  %v90_v45 = vld [vmem:[#allocation5 + $0xd0] sm:$0xff]  ;;  %v97_v47 = vld [vmem:[#allocation5 + $0x108] sm:$0xff] }
  0x42   :  { %667 = vmatprep.subr.bf16.mxu1 %v666_v31  ;;  %v94_v46 = vld [vmem:[#allocation5 + $0xf0] sm:$0xff]  ;;  %v101_v48 = vld [vmem:[#allocation5 + $0x128] sm:$0xff]  ;;  %v99_v49 = vld [vmem:[#allocation5 + $0x118] sm:$0xff]  ;;  %v652_v51 = vpack.c.bf16 %v92_v43, %v88_v42 }
  0x43   :  { %v103_v50 = vld [vmem:[#allocation5 + $0x138] sm:$0xff]  ;;  %v672_v52 = vpack.c.bf16 %v94_v46, %v90_v45  ;;  %v654_v53 = vpack.c.bf16 %v101_v48, %v97_v47  ;;  %v96_v54 = vld [vmem:[#allocation5 + $0x100] sm:$0xff]  ;;  %v98_v57 = vld [vmem:[#allocation5 + $0x110] sm:$0xff] }
  0x44   :  { %649 = vmatpush1.bf16.msra.mxu0 %v648_v35  ;;  %v100_v55 = vld [vmem:[#allocation5 + $0x120] sm:$0xff]  ;;  %v674_v56 = vpack.c.bf16 %v103_v50, %v99_v49  ;;  %v102_v58 = vld [vmem:[#allocation5 + $0x130] sm:$0xff]  ;;  %v105_v61 = vld [vmem:[#allocation5 + $0x148] sm:$0x3] }
  0x45   :  { %669 = vmatpush1.bf16.msra.mxu1 %v668_v39  ;;  %651 = vmatprep.subr.bf16.mxu0 %v650_v40  ;;  %v656_v59 = vpack.c.bf16 %v100_v55, %v96_v54  ;;  %v676_v60 = vpack.c.bf16 %v102_v58, %v98_v57  ;;  %v107_v62 = vld [vmem:[#allocation5 + $0x158] sm:$0x3]  ;;  %v104_v63 = vld [vmem:[#allocation5 + $0x140] sm:$0x3]  ;;  %v106_v1 = vld [vmem:[#allocation5 + $0x150] sm:$0x3] }
  0x46   :  { %671 = vmatprep.subr.bf16.mxu1 %v670_v44  ;;  %v328_v2 = vld [vmem:[#allocation7 + $0x80] sm:$0xff]  ;;  %v329_v3 = vld [vmem:[#allocation7 + $0x88] sm:$0xff]  ;;  %v62_v8 = vld [vmem:[#allocation2] sm:$0xff] }
  0x47   :  { %v360_v4 = vld [vmem:[#allocation7 + $0x180] sm:$0xff]  ;;  %v361_v5 = vld [vmem:[#allocation7 + $0x188] sm:$0xff]  ;;  %v678_v11 = vpack.c.bf16 %v329_v3, %v328_v2  ;;  %v330_v12 = vld [vmem:[#allocation7 + $0x90] sm:$0xff] }
  0x48   :  { %653 = vmatpush1.bf16.msra.mxu0 %v652_v51  ;;  %v312_v6 = vld [vmem:[#allocation7] sm:$0xff]  ;;  %v313_v7 = vld [vmem:[#allocation7 + $0x8] sm:$0xff]  ;;  %v331_v13 = vld [vmem:[#allocation7 + $0x98] sm:$0xff]  ;;  %v710_v15 = vpack.c.bf16 %v361_v5, %v360_v4 }
  0x49   :  { %673 = vmatpush1.bf16.msra.mxu1 %v672_v52  ;;  %655 = vmatprep.subr.bf16.mxu0 %v654_v53  ;;  %v344_v9 = vld [vmem:[#allocation7 + $0x100] sm:$0xff]  ;;  %v345_v10 = vld [vmem:[#allocation7 + $0x108] sm:$0xff]  ;;  %v63_v14 = vld [vmem:[#allocation2 + $0x8] sm:$0xff]  ;;  %v680_v16 = vpack.c.bf16 %v313_v7, %v312_v6  ;;  %v682_v23 = vpack.c.bf16 %v331_v13, %v330_v12 }
  0x4a   :  { %675 = vmatprep.subr.bf16.mxu1 %v674_v56  ;;  %v362_v17 = vld [vmem:[#allocation7 + $0x190] sm:$0xff]  ;;  %v363_v18 = vld [vmem:[#allocation7 + $0x198] sm:$0xff]  ;;  %v712_v19 = vpack.c.bf16 %v345_v10, %v344_v9  ;;  %v332_v25 = vld [vmem:[#allocation7 + $0xa0] sm:$0xff] }
  0x4b   :  { %v314_v20 = vld [vmem:[#allocation7 + $0x10] sm:$0xff]  ;;  %v315_v21 = vld [vmem:[#allocation7 + $0x18] sm:$0xff]  ;;  %v333_v26 = vld [vmem:[#allocation7 + $0xa8] sm:$0xff]  ;;  %v714_v27 = vpack.c.bf16 %v363_v18, %v362_v17 }
  0x4c   :  { %657 = vmatpush1.bf16.msra.mxu0 %v656_v59  ;;  %v346_v22 = vld [vmem:[#allocation7 + $0x110] sm:$0xff]  ;;  %v347_v24 = vld [vmem:[#allocation7 + $0x118] sm:$0xff]  ;;  %v364_v28 = vld [vmem:[#allocation7 + $0x1a0] sm:$0xff]  ;;  %v684_v30 = vpack.c.bf16 %v315_v21, %v314_v20  ;;  %v686_v32 = vpack.c.bf16 %v333_v26, %v332_v25 }
  0x4d   :  { %677 = vmatpush1.bf16.msra.mxu1 %v676_v60  ;;  %553 = vmatprep.subr.msk.mxu0 %vm137_vm0, %v105_v61  ;;  %v365_v29 = vld [vmem:[#allocation7 + $0x1a8] sm:$0xff]  ;;  %v716_v31 = vpack.c.bf16 %v347_v24, %v346_v22  ;;  %v316_v33 = vld [vmem:[#allocation7 + $0x20] sm:$0xff]  ;;  %v334_v37 = vld [vmem:[#allocation7 + $0xb0] sm:$0xff] }
  0x4e   :  { %557 = vmatprep.subr.msk.mxu1 %vm137_vm0, %v107_v62  ;;  %v317_v34 = vld [vmem:[#allocation7 + $0x28] sm:$0xff]  ;;  %v348_v35 = vld [vmem:[#allocation7 + $0x120] sm:$0xff]  ;;  %v718_v36 = vpack.c.bf16 %v365_v29, %v364_v28  ;;  %v335_v38 = vld [vmem:[#allocation7 + $0xb8] sm:$0xff] }
  0x4f   :  { %v366_v39 = vld [vmem:[#allocation7 + $0x1b0] sm:$0xff]  ;;  %v367_v40 = vld [vmem:[#allocation7 + $0x1b8] sm:$0xff]  ;;  %v688_v41 = vpack.c.bf16 %v317_v34, %v316_v33  ;;  %v690_v43 = vpack.c.bf16 %v335_v38, %v334_v37  ;;  %v336_v49 = vld [vmem:[#allocation7 + $0xc0] sm:$0xff] }
  0x50   :  { %554 = vmatpush1.msk.msra.mxu0 %vm137_vm0, %v104_v63  ;;  %v318_v44 = vld [vmem:[#allocation7 + $0x30] sm:$0xff]  ;;  %v319_v45 = vld [vmem:[#allocation7 + $0x38] sm:$0xff]  ;;  %v722_v47 = vpack.c.bf16 %v367_v40, %v366_v39  ;;  %v337_v50 = vld [vmem:[#allocation7 + $0xc8] sm:$0xff] }
  0x51   :  { %558 = vmatpush1.msk.msra.mxu1 %vm137_vm0, %v106_v1  ;;  %555 = vmatmul.mubr.msk.f32.vlgmr.msra.gmra.mrb[0].mxu0 %vm130_vm1, %v62_v8  ;;  %v350_v46 = vld [vmem:[#allocation7 + $0x130] sm:$0xff]  ;;  %v351_v48 = vld [vmem:[#allocation7 + $0x138] sm:$0xff]  ;;  %v368_v51 = vld [vmem:[#allocation7 + $0x1c0] sm:$0xff]  ;;  %v692_v53 = vpack.c.bf16 %v319_v45, %v318_v44  ;;  %v694_v55 = vpack.c.bf16 %v337_v50, %v336_v49 }
  0x52   :  { %559 = vmatmul.mubr.msk.f32.vlgmr.msra.gmra.mrb[0].mxu1 %vm130_vm1, %v62_v8  ;;  %220 = vmatprep.mubr.f32.mxu0 %v852_v0  ;;  %v369_v52 = vld [vmem:[#allocation7 + $0x1c8] sm:$0xff]  ;;  %v724_v54 = vpack.c.bf16 %v351_v48, %v350_v46  ;;  %v320_v56 = vld [vmem:[#allocation7 + $0x40] sm:$0xff]  ;;  %v338_v61 = vld [vmem:[#allocation7 + $0xd0] sm:$0xff] }
  0x53   :  { %297 = vmatprep.mubr.f32.mxu1 %v852_v0  ;;  %679 = vmatprep.subr.bf16.mxu0 %v678_v11  ;;  %v349_v0 = vld [vmem:[#allocation7 + $0x128] sm:$0xff]  ;;  %v352_v58 = vld [vmem:[#allocation7 + $0x140] sm:$0xff]  ;;  %v726_v59 = vpack.c.bf16 %v369_v52, %v368_v51  ;;  %v339_v62 = vld [vmem:[#allocation7 + $0xd8] sm:$0xff] }
  0x54   :  { %711 = vmatprep.subr.bf16.mxu1 %v710_v15  ;;  %681 = vmatpush3.bf16.msra.mxu0 %v680_v16  ;;  %v720_v42 = vpack.c.bf16 %v349_v0, %v348_v35  ;;  %v321_v57 = vld [vmem:[#allocation7 + $0x48] sm:$0xff]  ;;  %v370_v63 = vld [vmem:[#allocation7 + $0x1d0] sm:$0xff]  ;;  %v371_v1 = vld [vmem:[#allocation7 + $0x1d8] sm:$0xff]  ;;  %v698_v4 = vpack.c.bf16 %v339_v62, %v338_v61 }
  0x55   :  { %556 = vmatmul.mubr.msk.f32.gmra.mrb[2].mxu0 %vm130_vm1, %v63_v14  ;;  %713 = vmatpush3.bf16.msra.mxu1 %v712_v19  ;;  %v353_v60 = vld [vmem:[#allocation7 + $0x148] sm:$0xff]  ;;  %v696_v2 = vpack.c.bf16 %v321_v57, %v320_v56  ;;  %v322_v5 = vld [vmem:[#allocation7 + $0x50] sm:$0xff]  ;;  %v323_v6 = vld [vmem:[#allocation7 + $0x58] sm:$0xff]  ;;  %v730_v8 = vpack.c.bf16 %v371_v1, %v370_v63 }
  0x56   :  { %560 = vmatmul.mubr.msk.f32.gmra.mrb[2].mxu1 %vm130_vm1, %v63_v14  ;;  %683 = vmatprep.subr.bf16.mxu0 %v682_v23  ;;  %v728_v3 = vpack.c.bf16 %v353_v60, %v352_v58  ;;  %v354_v7 = vld [vmem:[#allocation7 + $0x150] sm:$0xff]  ;;  %v355_v9 = vld [vmem:[#allocation7 + $0x158] sm:$0xff]  ;;  %v340_v10 = vld [vmem:[#allocation7 + $0xe0] sm:$0xff]  ;;  %v700_v14 = vpack.c.bf16 %v323_v6, %v322_v5 }
  0x57   :  { %715 = vmatprep.subr.bf16.mxu1 %v714_v27  ;;  %v341_v11 = vld [vmem:[#allocation7 + $0xe8] sm:$0xff]  ;;  %v372_v12 = vld [vmem:[#allocation7 + $0x1e0] sm:$0xff]  ;;  %v732_v15 = vpack.c.bf16 %v355_v9, %v354_v7  ;;  %v342_v24 = vld [vmem:[#allocation7 + $0xf0] sm:$0xff] }
  0x58   :  { %685 = vmatpush3.bf16.msra.mxu0 %v684_v30  ;;  %v373_v13 = vld [vmem:[#allocation7 + $0x1e8] sm:$0xff]  ;;  %v702_v16 = vpack.c.bf16 %v341_v11, %v340_v10  ;;  %v324_v18 = vld [vmem:[#allocation7 + $0x60] sm:$0xff]  ;;  %v343_v25 = vld [vmem:[#allocation7 + $0xf8] sm:$0xff] }
  0x59   :  { %717 = vmatpush3.bf16.msra.mxu1 %v716_v31  ;;  %687 = vmatprep.subr.bf16.mxu0 %v686_v32  ;;  %v734_v17 = vpack.c.bf16 %v373_v13, %v372_v12  ;;  %v325_v19 = vld [vmem:[#allocation7 + $0x68] sm:$0xff]  ;;  %v356_v20 = vld [vmem:[#allocation7 + $0x160] sm:$0xff]  ;;  %v374_v26 = vld [vmem:[#allocation7 + $0x1f0] sm:$0xff]  ;;  %v706_v27 = vpack.c.bf16 %v343_v25, %v342_v24 }
  0x5a   :  { %719 = vmatprep.subr.bf16.mxu1 %v718_v36  ;;  %v704_v21 = vpack.c.bf16 %v325_v19, %v324_v18  ;;  %v357_v22 = vld [vmem:[#allocation7 + $0x168] sm:$0xff]  ;;  %v375_v28 = vld [vmem:[#allocation7 + $0x1f8] sm:$0xff]  ;;  %v326_v29 = vld [vmem:[#allocation7 + $0x70] sm:$0xff]  ;;  %v110_v36 = vlaneseq }
  0x5b   :  { %v736_v23 = vpack.c.bf16 %v357_v22, %v356_v20  ;;  %v327_v30 = vld [vmem:[#allocation7 + $0x78] sm:$0xff]  ;;  %v738_v31 = vpack.c.bf16 %v375_v28, %v374_v26  ;;  %v358_v33 = vld [vmem:[#allocation7 + $0x170] sm:$0xff] }
  0x5c   :  { %689 = vmatpush3.bf16.msra.mxu0 %v688_v41  ;;  %v708_v32 = vpack.c.bf16 %v327_v30, %v326_v29  ;;  %v359_v34 = vld [vmem:[#allocation7 + $0x178] sm:$0xff]  ;;  %v111_v0 = vshrl.u32 %v110_v36, 7  ;;  %v108_v38 = vld [vmem:[%s961_s2] sm:$0xf] }
  0x5d   :  { %721 = vmatpush3.bf16.msra.mxu1 %v720_v42  ;;  %691 = vmatprep.subr.bf16.mxu0 %v690_v43  ;;  %v740_v35 = vpack.c.bf16 %v359_v34, %v358_v33  ;;  %v561_v9 = vld [vmem:[%s963_s4] ss:$0 sm:$0xff]  ;;  %s817_s4 = scalar_lea.vmem %s541_s9, 256 }
  0x5e   :  { %723 = vmatprep.subr.bf16.mxu1 %v722_v47  ;;  %v112_v37 = vsub.s32 0, %v111_v0  ;;  %v120_v39 = vsub.s32 2, %v111_v0  ;;  %v116_v40 = vsub.s32 1, %v111_v0  ;;  %v124_v41 = vsub.s32 3, %v111_v0  ;;  %p818_p10 = scmp.ne.s32.totalorder %s541_s9, %s817_s4  ;;  %p823_p12 = scmp.lt.s32.totalorder %s817_s4, %s817_s4 }
  0x60   :  { %693 = vmatpush3.bf16.msra.mxu0 %v692_v53  ;;  %v113_v42 = vrot.slane %v108_v38, %v112_v37  ;;  %v121_v43 = vrot.slane %v108_v38, %v120_v39  ;;  %v117_v44 = vrot.slane %v108_v38, %v116_v40  ;;  %v125_v45 = vrot.slane %v108_v38, %v124_v41  ;;  %p824_p13 = por %p823_p12, %p822_p11 }
  0x61   :  { %725 = vmatpush3.bf16.msra.mxu1 %v724_v54  ;;  %695 = vmatprep.subr.bf16.mxu0 %v694_v55 }
  0x62   :  { %727 = vmatprep.subr.bf16.mxu1 %v726_v59  ;;  %p825_p0 = pnand %p824_p13, %p818_p10 }
  0x64   :  { %697 = vmatpush3.bf16.msra.mxu0 %v696_v2 }
  0x65   :  { %729 = vmatpush3.bf16.msra.mxu1 %v728_v3  ;;  %699 = vmatprep.subr.bf16.mxu0 %v698_v4 }
  0x66   :  { %731 = vmatprep.subr.bf16.mxu1 %v730_v8 }
  0x68   :  { %701 = vmatpush3.bf16.msra.mxu0 %v700_v14 }
  0x69   :  { %733 = vmatpush3.bf16.msra.mxu1 %v732_v15  ;;  %703 = vmatprep.subr.bf16.mxu0 %v702_v16 }
  0x6a   :  { %735 = vmatprep.subr.bf16.mxu1 %v734_v17 }
  0x6c   :  { %705 = vmatpush3.bf16.msra.mxu0 %v704_v21 }
  0x6d   :  { %737 = vmatpush3.bf16.msra.mxu1 %v736_v23  ;;  %707 = vmatprep.subr.bf16.mxu0 %v706_v27 }
  0x6e   :  { %739 = vmatprep.subr.bf16.mxu1 %v738_v31 }
  0x70   :  { %709 = vmatpush3.bf16.msra.mxu0 %v708_v32 }
  0x71   :  { %741 = vmatpush3.bf16.msra.mxu1 %v740_v35 }
 0x124   :  { %v216_v46 = vpop.f32.mrb[0].mxu0 }
 0x125   :  { %v217_v47 = vadd.f32 %v216_v46, %v113_v42  ;;  %v293_v48 = vpop.f32.mrb[0].mxu1  ;;  %v218_v49 = vpop.f32.mrb[1].mxu0 }
 0x126   :  { %v294_v50 = vadd.f32 %v293_v48, %v121_v43  ;;  %v219_v51 = vadd.f32 %v218_v49, %v117_v44  ;;  %v295_v52 = vpop.f32.mrb[1].mxu1 }
 0x127   :  { %v296_v53 = vadd.f32 %v295_v52, %v125_v45  ;;  %v304_v57 = vmax.f32 %v217_v47, 0.0 }
 0x128   :  { %v306_v54 = vmax.f32 %v294_v50, 0.0  ;;  %v305_v55 = vmax.f32 %v219_v51, 0.0  ;;  %v222_v56 = vpop.f32.mrb[2].mxu0 }
 0x129   :  { %v307_v58 = vmax.f32 %v296_v53, 0.0  ;;  %v223_v59 = vadd.f32 %v222_v56, %v113_v42  ;;  %v299_v60 = vpop.f32.mrb[2].mxu1  ;;  %v224_v61 = vpop.f32.mrb[3].mxu0 }
 0x12a   :  { %v300_v62 = vadd.f32 %v299_v60, %v121_v43  ;;  %v225_v63 = vadd.f32 %v224_v61, %v117_v44  ;;  %v301_v1 = vpop.f32.mrb[3].mxu1  ;;  %447 = vmatprep.mubr.f32.mxu0 %v305_v55 }
 0x12b   :  { %v302_v2 = vadd.f32 %v301_v1, %v125_v45  ;;  %522 = vmatprep.mubr.f32.mxu1 %v307_v58  ;;  %448 = vmatmul.mubr.f32.vlgmr.msra.gmra.mrb[4].mxu0 %v304_v57  ;;  %v308_v5 = vmax.f32 %v223_v59, 0.0 }
 0x12c   :  { %v310_v3 = vmax.f32 %v300_v62, 0.0  ;;  %v309_v4 = vmax.f32 %v225_v63, 0.0  ;;  %523 = vmatmul.mubr.f32.vlgmr.msra.gmra.mrb[4].mxu1 %v306_v54 }
 0x12d   :  { %v311_v6 = vmax.f32 %v302_v2, 0.0 }
 0x12e   :  { %452 = vmatprep.mubr.f32.mxu0 %v309_v4 }
 0x12f   :  { %527 = vmatprep.mubr.f32.mxu1 %v311_v6  ;;  %453 = vmatmul.mubr.f32.gmra.mrb[6].mxu0 %v308_v5 }
 0x130   :  { %528 = vmatmul.mubr.f32.gmra.mrb[6].mxu1 %v310_v3 }
 0x1fe   :  { %v594_v7 = vpop.f32.mrb[4].mxu0 }
 0x1ff   :  { %v632_v8 = vpop.f32.mrb[4].mxu1  ;;  %v595_v10 = vpop.f32.mrb[5].mxu0 }
 0x200   :  { %v596_v11 = vadd.f32 %v595_v10, %v594_v7  ;;  %v633_v12 = vpop.f32.mrb[5].mxu1 }
 0x201   :  { %v634_v13 = vadd.f32 %v633_v12, %v632_v8 }
 0x202   :  { %v450_v14 = vadd.f32 %v596_v11, %v561_v9  ;;  %v597_v15 = vpop.f32.mrb[6].mxu0 }
 0x203   :  { %v635_v16 = vpop.f32.mrb[6].mxu1  ;;  %v598_v17 = vpop.f32.mrb[7].mxu0 }
 0x204   :  { %v525_v18 = vadd.f32 %v634_v13, %v450_v14  ;;  %v599_v19 = vadd.f32 %v598_v17, %v597_v15  ;;  %v636_v20 = vpop.f32.mrb[7].mxu1 }
 0x205   :  { %v637_v21 = vadd.f32 %v636_v20, %v635_v16 }
 0x206   :  { %533 = vst [vmem:[#allocation8] sm:$0xff] %v525_v18  ;;  %v455_v22 = vadd.f32 %v599_v19, %v561_v9 }
 0x208   :  { %v530_v23 = vadd.f32 %v637_v21, %v455_v22 }
 0x20a   :  { %534 = vst [vmem:[#allocation8 + $0x8] sm:$0xff] %v530_v23 }
 0x20b   :  { %828 = shalt.err (!%p825_p0)
}
 0x20c   :  { %s829_s12 = scalar_lea.hbm %s964_s5, 256 }
 0x20d   :  { %p830_p1 = scmp.ne.s32.totalorder %s964_s5, %s829_s12  ;;  %p833_p2 = scmp.lt.u32.totalorder %s829_s12, %s964_s5 }
 0x20f   :  { %p835_p3 = pnand %p833_p2, %p830_p1 }
 0x211   :  { %838 = shalt.err (!%p835_p3)
}
 0x212   :  { %546 = dma.vmem_to_hbm [thread:$0]  %s541_s9, 256, %s964_s5, [#allocation4], %s849_s1, %s849_s1, %s850_s17  }
 0x213   :  { %843 = dma.done.wait [#allocation4], 256  }
 0x214   :  { %844 = vsyncadd [#allocation4], 4294967040 }
 0x215   :  { %550 = vsyncpa [#allocation3], 1 }
 0x216   :  { %551 = vsyncpa [#allocation6], 1 }
 0x217   :  { %552 = vsyncpa [#allocation4], 1 }

</bundles_post_ra>
